<compile_context>
chip_gen: v6e
topology: v6e:2x2x1
jax: 0.10.0
libtpu: 0.0.40
codegen_flags: <defaults>
</compile_context>

<pallas_src>
import functools

import jax
import jax.numpy as jnp
from jax import lax
from jax.experimental import pallas as pl
from jax.experimental.pallas import tpu as pltpu

IN_FEATURES = 23
H1 = 64
H2 = 32
OUT = 1
BN_EPS = 1e-5


def _net_kernel(x_ref, w1_ref, b1_ref, w2_ref, b2_ref, w3_ref, b3_ref, o_ref):
    # x_ref: (TB, 23) block of the original (B, 23) input — no wrapper transpose.
    x = x_ref[...]

    # Linear(23, 64) + ReLU (BN already folded into w1/b1).
    # Contract x's feature axis (last) against w1f's last axis -> (64, TB),
    # i.e. feature-major with the batch on the 128-wide lane axis.
    h1 = lax.dot_general(
        w1_ref[...], x,
        dimension_numbers=(((1,), (1,)), ((), ())),
        preferred_element_type=jnp.float32,
    ) + b1_ref[...]
    h1 = jnp.maximum(h1, 0.0)                                    # (64, TB)

    # Linear(64, 32) + ReLU
    h2 = jnp.dot(w2_ref[...], h1, preferred_element_type=jnp.float32) + b2_ref[...]
    h2 = jnp.maximum(h2, 0.0)                                    # (32, TB)

    # Linear(32, 1) on the MXU (huge slack there) instead of VPU mul + reduce.
    h3 = jnp.dot(w3_ref[...], h2, preferred_element_type=jnp.float32) + b3_ref[...]

    # Sigmoid on the EUP; (1, TB) output block -> lane-dense store.
    o_ref[...] = jax.nn.sigmoid(h3).astype(o_ref.dtype)


def _round_up(v, m):
    return ((v + m - 1) // m) * m


def net_forward(x, params, *, block_batch=16384):
    """x: (B, 23) float32. params: dict from init_params (PyTorch layout)."""
    assert block_batch % 128 == 0, "batch tile must be lane-aligned (x128)"
    B = x.shape[0]

    # Tile choice: as large as requested, but keep >= 2 grid steps when the
    # batch allows it (v7x megacore occupancy), lane-aligned to 128.
    TB = min(block_batch, max(128, _round_up(pl.cdiv(B, 2), 128)))
    num_blocks = pl.cdiv(B, TB)

    gamma, beta = params["gamma"], params["beta"]          # (23,), (23,)
    w1, b1 = params["w1"], params["b1"]                    # (64, 23), (64,)
    w2, b2 = params["w2"], params["b2"]                    # (32, 64), (32,)
    w3, b3 = params["w3"], params["b3"]                    # (1, 32),  (1,)

    # --- BatchNorm1d (training-mode batch stats), single fused pass over x ---
    n = jnp.float32(B)
    s1 = jnp.sum(x, axis=0)                                # (23,)
    s2 = jnp.sum(x * x, axis=0)                            # (23,)
    mean = s1 / n
    var = jnp.maximum(s2 / n - mean * mean, 0.0)           # biased var, clamped
    scale = gamma * lax.rsqrt(var + BN_EPS)                # (23,)
    shift = beta - mean * scale                            # (23,)
    w1f = w1 * scale[None, :]                              # (64, 23)
    b1f = b1 + w1 @ shift                                  # (64,)

    operands = (
        x,                                                 # (B, 23), read once
        w1f, b1f.reshape(H1, 1),
        w2, b2.reshape(H2, 1),
        w3,                                                # (1, 32)
        b3.reshape(1, 1),
    )

    in_specs = [
        pl.BlockSpec((TB, IN_FEATURES), lambda i: (i, 0)),   # x: advances with grid
        pl.BlockSpec((H1, IN_FEATURES), lambda i: (0, 0)),   # params: VMEM-resident
        pl.BlockSpec((H1, 1), lambda i: (0, 0)),
        pl.BlockSpec((H2, H1), lambda i: (0, 0)),
        pl.BlockSpec((H2, 1), lambda i: (0, 0)),
        pl.BlockSpec((OUT, H2), lambda i: (0, 0)),
        pl.BlockSpec((1, 1), lambda i: (0, 0)),
    ]
    out_specs = pl.BlockSpec((OUT, TB), lambda i: (0, i))

    out_t = pl.pallas_call(
        _net_kernel,
        out_shape=jax.ShapeDtypeStruct((OUT, B), jnp.float32),
        grid=(num_blocks,),
        in_specs=in_specs,
        out_specs=out_specs,
        compiler_params=pltpu.CompilerParams(
            dimension_semantics=("parallel",),
            vmem_limit_bytes=48 << 20,
        ),
    )(*operands)

    return out_t.T                                           # (B, 1)


def init_params(key):
    """PyTorch-style init: Linear weight (out, in) ~ U(-1/sqrt(in), 1/sqrt(in)),
    bias same bound; BatchNorm gamma=1, beta=0."""
    k1, k2, k3, k4, k5, k6 = jax.random.split(key, 6)

    def lin(kw, kb, fan_in, fan_out):
        bound = 1.0 / jnp.sqrt(jnp.float32(fan_in))
        w = jax.random.uniform(kw, (fan_out, fan_in), jnp.float32, -bound, bound)
        b = jax.random.uniform(kb, (fan_out,), jnp.float32, -bound, bound)
        return w, b

    w1, b1 = lin(k1, k2, IN_FEATURES, H1)
    w2, b2 = lin(k3, k4, H1, H2)
    w3, b3 = lin(k5, k6, H2, OUT)
    return {
        "gamma": jnp.ones((IN_FEATURES,), jnp.float32),
        "beta": jnp.zeros((IN_FEATURES,), jnp.float32),
        "w1": w1, "b1": b1,
        "w2": w2, "b2": b2,
        "w3": w3, "b3": b3,
    }


def _reference(x, p):
    mean = jnp.mean(x, axis=0, keepdims=True)
    var = jnp.mean((x - mean) ** 2, axis=0, keepdims=True)
    xn = (x - mean) / jnp.sqrt(var + BN_EPS) * p["gamma"] + p["beta"]
    h1 = jnp.maximum(xn @ p["w1"].T + p["b1"], 0.0)
    h2 = jnp.maximum(h1 @ p["w2"].T + p["b2"], 0.0)
    return jax.nn.sigmoid(h2 @ p["w3"].T + p["b3"])


if __name__ == "__main__":
    key = jax.random.PRNGKey(0)
    kx, kx2, kp = jax.random.split(key, 3)
    params = init_params(kp)

    fwd = jax.jit(functools.partial(net_forward, block_batch=16384))

    # Even batch: clamp keeps 2 grid steps (megacore-friendly).
    B = 1024
    x = jax.random.normal(kx, (B, IN_FEATURES), jnp.float32)
    out = jax.block_until_ready(fwd(x, params))
    ref = _reference(x, params)
    assert out.shape == (B, OUT), out.shape
    assert jnp.allclose(out, ref, atol=5e-5, rtol=1e-4)

    # Ragged batch: partial tail block, no padding pass over x.
    B2 = 300
    x2 = jax.random.normal(kx2, (B2, IN_FEATURES), jnp.float32)
    out2 = jax.block_until_ready(fwd(x2, params))
    ref2 = _reference(x2, params)
    assert out2.shape == (B2, OUT), out2.shape
    assert jnp.allclose(out2, ref2, atol=5e-5, rtol=1e-4)

    print("KERNEL_OK")
</pallas_src>

<mosaic_0001>
module attributes {stable_mosaic.version = 11 : i64} {
  func.func @_net_kernel(%arg0: i32, %arg1: memref<512x23xf32, #tpu.memory_space<vmem>>, %arg2: memref<64x23xf32, #tpu.memory_space<vmem>>, %arg3: memref<64x1xf32, #tpu.memory_space<vmem>>, %arg4: memref<32x64xf32, #tpu.memory_space<vmem>>, %arg5: memref<32x1xf32, #tpu.memory_space<vmem>>, %arg6: memref<1x32xf32, #tpu.memory_space<vmem>>, %arg7: memref<1x1xf32, #tpu.memory_space<vmem>>, %arg8: memref<1x512xf32, #tpu.memory_space<vmem>>) attributes {dimension_semantics = [#tpu.dimension_semantics<parallel>], iteration_bounds = array<i64: 2>, scalar_prefetch = 0 : i64, scratch_operands = 0 : i64, tpu.core_type = #tpu.core_type<tc>, window_params = [{transform_indices = @transform_0, window_bounds = array<i64: 512, 23>}, {pipeline_mode = #tpu.pipeline_mode<synchronous>, transform_indices = @transform_1, window_bounds = array<i64: 64, 23>}, {pipeline_mode = #tpu.pipeline_mode<synchronous>, transform_indices = @transform_2, window_bounds = array<i64: 64, 1>}, {pipeline_mode = #tpu.pipeline_mode<synchronous>, transform_indices = @transform_3, window_bounds = array<i64: 32, 64>}, {pipeline_mode = #tpu.pipeline_mode<synchronous>, transform_indices = @transform_4, window_bounds = array<i64: 32, 1>}, {pipeline_mode = #tpu.pipeline_mode<synchronous>, transform_indices = @transform_5, window_bounds = array<i64: 1, 32>}, {pipeline_mode = #tpu.pipeline_mode<synchronous>, transform_indices = @transform_6, window_bounds = array<i64: 1, 1>}, {transform_indices = @transform_7, window_bounds = array<i64: 1, 512>}]} {
    %c0 = arith.constant 0 : index
    %c0_0 = arith.constant 0 : index
    %0 = vector.load %arg1[%c0, %c0_0] : memref<512x23xf32, #tpu.memory_space<vmem>>, vector<512x23xf32>
    %c0_1 = arith.constant 0 : index
    %c0_2 = arith.constant 0 : index
    %1 = vector.load %arg2[%c0_1, %c0_2] : memref<64x23xf32, #tpu.memory_space<vmem>>, vector<64x23xf32>
    %cst = arith.constant dense<0.000000e+00> : vector<64x512xf32>
    %2 = tpu.matmul %1, %0, %cst {dimension_numbers = #tpu.dot_dimension_numbers<[1], [1], [0], [0], [0, 0, 1, 0], [], []>} : vector<64x23xf32>, vector<512x23xf32>, vector<64x512xf32> -> vector<64x512xf32>
    %c0_3 = arith.constant 0 : index
    %c0_4 = arith.constant 0 : index
    %3 = vector.load %arg3[%c0_3, %c0_4] : memref<64x1xf32, #tpu.memory_space<vmem>>, vector<64x1xf32>
    %4 = vector.broadcast %3 : vector<64x1xf32> to vector<64x512xf32>
    %5 = arith.addf %2, %4 : vector<64x512xf32>
    %cst_5 = arith.constant 0.000000e+00 : f32
    %6 = vector.broadcast %cst_5 : f32 to vector<64x512xf32>
    %7 = arith.maximumf %5, %6 : vector<64x512xf32>
    %c0_6 = arith.constant 0 : index
    %c0_7 = arith.constant 0 : index
    %8 = vector.load %arg4[%c0_6, %c0_7] : memref<32x64xf32, #tpu.memory_space<vmem>>, vector<32x64xf32>
    %cst_8 = arith.constant dense<0.000000e+00> : vector<32x512xf32>
    %9 = tpu.matmul %8, %7, %cst_8 {dimension_numbers = #tpu.dot_dimension_numbers<[1], [0], [0], [1], [0, 0, 1, 1], [], []>} : vector<32x64xf32>, vector<64x512xf32>, vector<32x512xf32> -> vector<32x512xf32>
    %c0_9 = arith.constant 0 : index
    %c0_10 = arith.constant 0 : index
    %10 = vector.load %arg5[%c0_9, %c0_10] : memref<32x1xf32, #tpu.memory_space<vmem>>, vector<32x1xf32>
    %11 = vector.broadcast %10 : vector<32x1xf32> to vector<32x512xf32>
    %12 = arith.addf %9, %11 : vector<32x512xf32>
    %cst_11 = arith.constant 0.000000e+00 : f32
    %13 = vector.broadcast %cst_11 : f32 to vector<32x512xf32>
    %14 = arith.maximumf %12, %13 : vector<32x512xf32>
    %c0_12 = arith.constant 0 : index
    %c0_13 = arith.constant 0 : index
    %15 = vector.load %arg6[%c0_12, %c0_13] : memref<1x32xf32, #tpu.memory_space<vmem>>, vector<1x32xf32>
    %cst_14 = arith.constant dense<0.000000e+00> : vector<1x512xf32>
    %16 = tpu.matmul %15, %14, %cst_14 {dimension_numbers = #tpu.dot_dimension_numbers<[1], [0], [0], [1], [0, 0, 1, 1], [], []>} : vector<1x32xf32>, vector<32x512xf32>, vector<1x512xf32> -> vector<1x512xf32>
    %c0_15 = arith.constant 0 : index
    %c0_16 = arith.constant 0 : index
    %17 = vector.load %arg7[%c0_15, %c0_16] : memref<1x1xf32, #tpu.memory_space<vmem>>, vector<1x1xf32>
    %18 = vector.broadcast %17 : vector<1x1xf32> to vector<1x512xf32>
    %19 = arith.addf %16, %18 : vector<1x512xf32>
    %20 = arith.negf %19 : vector<1x512xf32>
    %21 = math.exp %20 : vector<1x512xf32>
    %cst_17 = arith.constant 1.000000e+00 : f32
    %22 = vector.broadcast %cst_17 : f32 to vector<1x512xf32>
    %23 = arith.addf %22, %21 : vector<1x512xf32>
    %24 = arith.divf %22, %23 : vector<1x512xf32>
    %c0_18 = arith.constant 0 : index
    %c0_19 = arith.constant 0 : index
    %25 = vector.load %arg8[%c0_18, %c0_19] : memref<1x512xf32, #tpu.memory_space<vmem>>, vector<1x512xf32>
    tpu.vector_store %arg8[%c0_18, %c0_19], %24 {strides = array<i32>} : memref<1x512xf32, #tpu.memory_space<vmem>>, vector<1x512xf32>,
    return
  }
  func.func @transform_0(%arg0: i32) -> (i32, i32) {
    %c0_i32 = arith.constant 0 : i32
    %c0_i32_0 = arith.constant 0 : i32
    return %arg0, %c0_i32 : i32, i32
  }
  func.func @transform_1(%arg0: i32) -> (i32, i32) {
    %c0_i32 = arith.constant 0 : i32
    %c0_i32_0 = arith.constant 0 : i32
    %c0_i32_1 = arith.constant 0 : i32
    return %c0_i32, %c0_i32_0 : i32, i32
  }
  func.func @transform_2(%arg0: i32) -> (i32, i32) {
    %c0_i32 = arith.constant 0 : i32
    %c0_i32_0 = arith.constant 0 : i32
    %c0_i32_1 = arith.constant 0 : i32
    return %c0_i32, %c0_i32_0 : i32, i32
  }
  func.func @transform_3(%arg0: i32) -> (i32, i32) {
    %c0_i32 = arith.constant 0 : i32
    %c0_i32_0 = arith.constant 0 : i32
    %c0_i32_1 = arith.constant 0 : i32
    return %c0_i32, %c0_i32_0 : i32, i32
  }
  func.func @transform_4(%arg0: i32) -> (i32, i32) {
    %c0_i32 = arith.constant 0 : i32
    %c0_i32_0 = arith.constant 0 : i32
    %c0_i32_1 = arith.constant 0 : i32
    return %c0_i32, %c0_i32_0 : i32, i32
  }
  func.func @transform_5(%arg0: i32) -> (i32, i32) {
    %c0_i32 = arith.constant 0 : i32
    %c0_i32_0 = arith.constant 0 : i32
    %c0_i32_1 = arith.constant 0 : i32
    return %c0_i32, %c0_i32_0 : i32, i32
  }
  func.func @transform_6(%arg0: i32) -> (i32, i32) {
    %c0_i32 = arith.constant 0 : i32
    %c0_i32_0 = arith.constant 0 : i32
    %c0_i32_1 = arith.constant 0 : i32
    return %c0_i32, %c0_i32_0 : i32, i32
  }
  func.func @transform_7(%arg0: i32) -> (i32, i32) {
    %c0_i32 = arith.constant 0 : i32
    %c0_i32_0 = arith.constant 0 : i32
    return %c0_i32, %arg0 : i32, i32
  }
}

</mosaic_0001>

<bundles_post_ra>
// kernel: net_forward.1
= control target key start
LH: loop header
LB: loop body
LE: loop exit
PB: predicated region body
PF: predicated region fallthrough
CT: control target
= control target key end

     0   :  { %s2156_s0 = inlined_call_operand.vmem [shape: f32[1024,23], index: 0, kind: input, shape index: {}]   ;;  %s2157_s1 = inlined_call_operand.vmem [shape: f32[64,23], index: 1, kind: input, shape index: {}]   ;;  %s2158_s2 = inlined_call_operand.vmem [shape: f32[64,1], index: 2, kind: input, shape index: {}]   ;;  %s2159_s3 = inlined_call_operand.vmem [shape: f32[32,64], index: 3, kind: input, shape index: {}]   ;;  %s2160_s4 = inlined_call_operand.vmem [shape: f32[32,1], index: 4, kind: input, shape index: {}]   ;;  %s2161_s5 = inlined_call_operand.vmem [shape: f32[1,32], index: 5, kind: input, shape index: {}]   ;;  %s2162_s6 = inlined_call_operand.<no memory space> [shape: f32[1,1], index: 6, kind: input, shape index: {}]   ;;  %s2163_s7 = inlined_call_operand.hbm [shape: f32[1,1024], index: 7, kind: output, shape index: {}]  }
   0x1   :  { %v12_v0 = vstv %s2162_s6 }
   0x2   :  { %13 = vst [vmem:[#allocation2] sm:$0x1] %v12_v0 }
   0x3   :  { %14 = vsyncpa [#allocation4], 0 }
   0x4   :  { %16 = vsyncpa [#allocation4 + $0x1], 0  ;;  %s1773_s26 = smov 0   ;;  %s1775_s27 = smov 0  }
   0x5   :  { %s1777_s28 = smov 0   ;;  %s1779_s29 = smov 0  }
   0x6 LB: > { %s1400_s6 = sadd.s32 4294967295, %s1724_s29   ;;  %s1401_s30 = sadd.s32 4294967294, %s1724_s29   ;;  %s1724_s29 = sphi %s1779_s29, %s2169_s29   ;;  %s1720_s28 = sphi %s1777_s28, %s2168_s28   ;;  %s1716_s27 = sphi %s1775_s27, %s2167_s27   ;;  %s1712_s26 = sphi %s1773_s26, %s2166_s26  }
   0x7   : > { %s1796_s8 = sadd.s32 1, %s1724_s29   ;;  %s181_s9 = sadd.s32 1, %s1720_s28 }
   0x8   : > { %s178_s10 = ssub.s32 %s1724_s29, %s1796_s8  ;;  %p191_p0 = scmp.ne.s32.totalorder %s1720_s28, %s1716_s27 }
   0x9   : > { %p179_p1 = scmp.eq.s32.totalorder %s178_s10, 0  ;;  %p192_p2 = scmp.eq.s32.totalorder %s1400_s6, 1 }
   0xa   : > { %p197_p3 = scmp.ne.s32.totalorder %s1716_s27, %s1712_s26  ;;  %p198_p4 = scmp.eq.s32.totalorder %s1401_s30, 1 }
   0xb   : > { %s1806_s11 = scalar_select %p179_p1, %s1720_s28, %s181_s9  }
   0xc   : > { %p1808_p5 = por %p192_p2, %p191_p0  ;;  %p1812_p6 = por %p198_p4, %p197_p3 }
   0xd   : > { %p1404_p7 = scmp.ge.s32.totalorder %s1724_s29, 1  ;;  %p243_p8 = scmp.lt.s32.totalorder %s1724_s29, 3 }
   0xf   : > { %p244_p9 = pnand %p1404_p7, %p243_p8 }
  0x10   : > { %s1818_s14 = sshll.u32 (!%p244_p9), %s1400_s6, 6  ;;  %s272_s25 = sand.u32 (!%p244_p9), 1, %s1716_s27  }
  0x11   : > { %247 = sbr.rel (%p244_p9) target bundleno = 805 (0x325), region = 48  ;;  %p276_p10 = scmp.lt.s32.totalorder (!%p244_p9), %s1818_s14, 127 }
  0x12   : > { %s1405_s6 = sshll.u32 (!%p244_p9), %s272_s25, 2  ;;  %s1340_s17 = scalar_lea.hbm (!%p244_p9), %s2163_s7, %s1818_s14 }
  0x13   : > { %s274_s9 = scalar_lea.vmem (!%p244_p9), [#allocation3], %s1405_s6  ;;  %s1328_s18 = scalar_lea.sflag (!%p244_p9), [#allocation4], %s272_s25 }
  0x14   : > { %s1342_s10 = sshll.u32 (!%p244_p9), %s274_s9, 4  ;;  %s1343_s10 = int_to_ptr.vmem [resolvable:$true] %s1342_s10 }
  0x16   : > { %vm402_vm0 = vcmask 187392   ;;  %v1823_v1 = vld [vmem:[%s2157_s1] sm:$0xff]  ;;  %v1726_v2 = vmov 0   ;;  %v359_v3 = vld [vmem:[%s2158_s2 + $0x28] sm:$0xff]  ;;  %s277_s19 = scalar_select %p276_p10, %s1818_s14, 127  ;;  %v361_v4 = vld [vmem:[%s2158_s2 + $0x38] sm:$0xff] }
  0x17   : > { %1540 = vmatprep.mubr.msk.f32.mxu0 %vm402_vm0, %v1823_v1  ;;  %1588 = vmatprep.mubr.msk.f32.mxu1 %vm402_vm0, %v1823_v1  ;;  %v358_v5 = vld [vmem:[%s2158_s2 + $0x20] sm:$0xff]  ;;  %v360_v6 = vld [vmem:[%s2158_s2 + $0x30] sm:$0xff]  ;;  %v357_v18 = vld [vmem:[%s2158_s2 + $0x18] sm:$0xff]  ;;  %vm905_vm1 = vcmask 523264   ;;  %vm1123_vm2 = vcmask 261120  }
  0x18   : > { %1647 = vset.pattern.permute.xlu1 %v1726_v2  ;;  %1646 = vset.pattern.permute.xlu0 %v1726_v2  ;;  %s1407_s24 = sshll.u32 %s277_s19, 3  ;;  %v356_v7 = vld [vmem:[%s2158_s2 + $0x10] sm:$0xff]  ;;  %v354_v19 = vld [vmem:[%s2158_s2] sm:$0xff]  ;;  %v355_v24 = vld [vmem:[%s2158_s2 + $0x8] sm:$0xff]  ;;  %s1664_s19 = scalar_lea.vmem %s1343_s10, 64 }
  0x19   : > { %389 = vperm.xlu1 %1647, %v359_v3   ;;  %399 = vperm.xlu0 %1646, %v361_v4   ;;  %s1843_s30 = scalar_lea.vmem %s2156_s0, %s1407_s24  ;;  %v883_v25 = vld [vmem:[%s2160_s4 + $0x10] sm:$0xff]  ;;  %v884_v30 = vld [vmem:[%s2160_s4 + $0x18] sm:$0xff]  ;;  %v881_v31 = vld [vmem:[%s2160_s4] sm:$0xff]  ;;  %p1665_p11 = scmp.ne.s32.totalorder %s1343_s10, %s1664_s19 }
  0x1a   : > { %v313_v8 = vld [vmem:[%s1843_s30 + $0xf8] sm:$0xff]  ;;  %v312_v12 = vld [vmem:[%s1843_s30 + $0xf0] sm:$0xff]  ;;  %v311_v16 = vld [vmem:[%s1843_s30 + $0xe8] sm:$0xff] }
  0x1b   : > { %v345_v9 = vld [vmem:[%s1843_s30 + $0x1f8] sm:$0xff]  ;;  %1508 = vmatprep.subr.msk.mxu0 %vm402_vm0, %v313_v8  ;;  %v344_v13 = vld [vmem:[%s1843_s30 + $0x1f0] sm:$0xff]  ;;  %v343_v17 = vld [vmem:[%s1843_s30 + $0x1e8] sm:$0xff]  ;;  %p1666_p12 = pnand %p1665_p11, %p1808_p5 }
  0x1c   : > { %v297_v10 = vld [vmem:[%s1843_s30 + $0x78] sm:$0xff]  ;;  %1556 = vmatprep.subr.msk.mxu1 %vm402_vm0, %v345_v9  ;;  %v296_v14 = vld [vmem:[%s1843_s30 + $0x70] sm:$0xff]  ;;  %v295_v20 = vld [vmem:[%s1843_s30 + $0x68] sm:$0xff] }
  0x1d   : > { %384 = vperm.xlu1 %1647, %v358_v5   ;;  %v329_v11 = vld [vmem:[%s1843_s30 + $0x178] sm:$0xff]  ;;  %1509 = vmatpush3.xpose.msk.msra.mxu0 %vm402_vm0, %v297_v10  ;;  %v328_v15 = vld [vmem:[%s1843_s30 + $0x170] sm:$0xff]  ;;  %v327_v21 = vld [vmem:[%s1843_s30 + $0x168] sm:$0xff]  ;;  %p1667_p13 = pneg %p1666_p12 }
  0x1e   : > { %1557 = vmatpush3.xpose.msk.msra.mxu1 %vm402_vm0, %v329_v11  ;;  %1510 = vmatprep.subr.msk.mxu0 %vm402_vm0, %v312_v12  ;;  %v310_v22 = vld [vmem:[%s1843_s30 + $0xe0] sm:$0xff]  ;;  %v309_v28 = vld [vmem:[%s1843_s30 + $0xd8] sm:$0xff]  ;;  %v308_v34 = vld [vmem:[%s1843_s30 + $0xd0] sm:$0xff] }
  0x1f   : > { %1558 = vmatprep.subr.msk.mxu1 %vm402_vm0, %v344_v13  ;;  %394 = vperm.xlu0 %1646, %v360_v6   ;;  %v342_v23 = vld [vmem:[%s1843_s30 + $0x1e0] sm:$0xff]  ;;  %v341_v29 = vld [vmem:[%s1843_s30 + $0x1d8] sm:$0xff]  ;;  %v340_v35 = vld [vmem:[%s1843_s30 + $0x1d0] sm:$0xff] }
  0x20   : > { %v294_v26 = vld [vmem:[%s1843_s30 + $0x60] sm:$0xff]  ;;  %v293_v32 = vld [vmem:[%s1843_s30 + $0x58] sm:$0xff]  ;;  %v882_v36 = vld [vmem:[%s2160_s4 + $0x8] sm:$0xff] }
  0x21   : > { %374 = vperm.xlu1 %1647, %v356_v7   ;;  %1511 = vmatpush3.xpose.msk.msra.mxu0 %vm402_vm0, %v296_v14  ;;  %v326_v27 = vld [vmem:[%s1843_s30 + $0x160] sm:$0xff]  ;;  %v325_v33 = vld [vmem:[%s1843_s30 + $0x158] sm:$0xff]  ;;  %v292_v37 = vld [vmem:[%s1843_s30 + $0x50] sm:$0xff] }
  0x22   : > { %1559 = vmatpush3.xpose.msk.msra.mxu1 %vm402_vm0, %v328_v15  ;;  %1512 = vmatprep.subr.msk.mxu0 %vm402_vm0, %v311_v16  ;;  %v324_v38 = vld [vmem:[%s1843_s30 + $0x150] sm:$0xff]  ;;  %v307_v39 = vld [vmem:[%s1843_s30 + $0xc8] sm:$0xff]  ;;  %v1113_v41 = vld [vmem:[#allocation2] sm:$0x1] }
  0x23   : > { %1560 = vmatprep.subr.msk.mxu1 %vm402_vm0, %v343_v17  ;;  %379 = vperm.xlu0 %1646, %v357_v18   ;;  %v339_v40 = vld [vmem:[%s1843_s30 + $0x1c8] sm:$0xff]  ;;  %v306_v44 = vld [vmem:[%s1843_s30 + $0xc0] sm:$0xff]  ;;  %v305_v48 = vld [vmem:[%s1843_s30 + $0xb8] sm:$0xff] }
  0x24   : > { %v291_v42 = vld [vmem:[%s1843_s30 + $0x48] sm:$0xff]  ;;  %v338_v45 = vld [vmem:[%s1843_s30 + $0x1c0] sm:$0xff]  ;;  %v337_v49 = vld [vmem:[%s1843_s30 + $0x1b8] sm:$0xff] }
  0x25   : > { %364 = vperm.xlu1 %1647, %v354_v19   ;;  %1513 = vmatpush3.xpose.msk.msra.mxu0 %vm402_vm0, %v295_v20  ;;  %v323_v43 = vld [vmem:[%s1843_s30 + $0x148] sm:$0xff]  ;;  %v290_v46 = vld [vmem:[%s1843_s30 + $0x40] sm:$0xff]  ;;  %v289_v50 = vld [vmem:[%s1843_s30 + $0x38] sm:$0xff] }
  0x26   : > { %1561 = vmatpush3.xpose.msk.msra.mxu1 %vm402_vm0, %v327_v21  ;;  %1514 = vmatprep.subr.msk.mxu0 %vm402_vm0, %v310_v22  ;;  %v322_v47 = vld [vmem:[%s1843_s30 + $0x140] sm:$0xff]  ;;  %v321_v51 = vld [vmem:[%s1843_s30 + $0x138] sm:$0xff]  ;;  %v304_v52 = vld [vmem:[%s1843_s30 + $0xb0] sm:$0xff] }
  0x27   : > { %1562 = vmatprep.subr.msk.mxu1 %vm402_vm0, %v342_v23  ;;  %369 = vperm.xlu0 %1646, %v355_v24   ;;  %v336_v53 = vld [vmem:[%s1843_s30 + $0x1b0] sm:$0xff]  ;;  %v303_v56 = vld [vmem:[%s1843_s30 + $0xa8] sm:$0xff]  ;;  %v302_v60 = vld [vmem:[%s1843_s30 + $0xa0] sm:$0xff]  ;;  %v1727_v23 = vmov 0.0  }
  0x28   : > { %v288_v54 = vld [vmem:[%s1843_s30 + $0x30] sm:$0xff]  ;;  %v335_v57 = vld [vmem:[%s1843_s30 + $0x1a8] sm:$0xff]  ;;  %v334_v61 = vld [vmem:[%s1843_s30 + $0x1a0] sm:$0xff] }
  0x29   : > { %897 = vperm.xlu1 %1647, %v883_v25   ;;  %1515 = vmatpush3.xpose.msk.msra.mxu0 %vm402_vm0, %v294_v26  ;;  %v320_v55 = vld [vmem:[%s1843_s30 + $0x130] sm:$0xff]  ;;  %v287_v58 = vld [vmem:[%s1843_s30 + $0x28] sm:$0xff]  ;;  %v286_v62 = vld [vmem:[%s1843_s30 + $0x20] sm:$0xff] }
  0x2a   : > { %1563 = vmatpush3.xpose.msk.msra.mxu1 %vm402_vm0, %v326_v27  ;;  %1516 = vmatprep.subr.msk.mxu0 %vm402_vm0, %v309_v28  ;;  %v319_v59 = vld [vmem:[%s1843_s30 + $0x128] sm:$0xff]  ;;  %v318_v63 = vld [vmem:[%s1843_s30 + $0x120] sm:$0xff]  ;;  %v301_v0 = vld [vmem:[%s1843_s30 + $0x98] sm:$0xff] }
  0x2b   : > { %1564 = vmatprep.subr.msk.mxu1 %vm402_vm0, %v341_v29  ;;  %902 = vperm.xlu0 %1646, %v884_v30   ;;  %v333_v2 = vld [vmem:[%s1843_s30 + $0x198] sm:$0xff]  ;;  %v300_v5 = vld [vmem:[%s1843_s30 + $0x90] sm:$0xff]  ;;  %v299_v9 = vld [vmem:[%s1843_s30 + $0x88] sm:$0xff] }
  0x2c   : > { %v285_v3 = vld [vmem:[%s1843_s30 + $0x18] sm:$0xff]  ;;  %v332_v6 = vld [vmem:[%s1843_s30 + $0x190] sm:$0xff]  ;;  %v331_v10 = vld [vmem:[%s1843_s30 + $0x188] sm:$0xff] }
  0x2d   : > { %887 = vperm.xlu1 %1647, %v881_v31   ;;  %1517 = vmatpush3.xpose.msk.msra.mxu0 %vm402_vm0, %v293_v32  ;;  %v317_v4 = vld [vmem:[%s1843_s30 + $0x118] sm:$0xff]  ;;  %v284_v7 = vld [vmem:[%s1843_s30 + $0x10] sm:$0xff]  ;;  %v283_v11 = vld [vmem:[%s1843_s30 + $0x8] sm:$0xff] }
  0x2e   : > { %1565 = vmatpush3.xpose.msk.msra.mxu1 %vm402_vm0, %v325_v33  ;;  %1518 = vmatprep.subr.msk.mxu0 %vm402_vm0, %v308_v34  ;;  %v316_v8 = vld [vmem:[%s1843_s30 + $0x110] sm:$0xff]  ;;  %v315_v12 = vld [vmem:[%s1843_s30 + $0x108] sm:$0xff]  ;;  %v298_v13 = vld [vmem:[%s1843_s30 + $0x80] sm:$0xff] }
  0x2f   : > { %1566 = vmatprep.subr.msk.mxu1 %vm402_vm0, %v340_v35  ;;  %892 = vperm.xlu0 %1646, %v882_v36   ;;  %v330_v14 = vld [vmem:[%s1843_s30 + $0x180] sm:$0xff]  ;;  %v347_v17 = vld [vmem:[%s2157_s1 + $0x8] sm:$0xff]  ;;  %v348_v18 = vld [vmem:[%s2157_s1 + $0x10] sm:$0xff] }
  0x30   : > { %v282_v15 = vld [vmem:[%s1843_s30] sm:$0xff]  ;;  %v351_v20 = vld [vmem:[%s2157_s1 + $0x28] sm:$0xff]  ;;  %v352_v21 = vld [vmem:[%s2157_s1 + $0x30] sm:$0xff] }
  0x31   : > { %1519 = vmatpush3.xpose.msk.msra.mxu0 %vm402_vm0, %v292_v37  ;;  %v314_v16 = vld [vmem:[%s1843_s30 + $0x100] sm:$0xff]  ;;  %v353_v22 = vld [vmem:[%s2157_s1 + $0x38] sm:$0xff]  ;;  %s1729_s30 = smov [#allocation3]  }
  0x32   : > { %1567 = vmatpush3.xpose.msk.msra.mxu1 %vm402_vm0, %v324_v38  ;;  %1520 = vmatprep.subr.msk.mxu0 %vm402_vm0, %v307_v39  ;;  %v350_v19 = vld [vmem:[%s2157_s1 + $0x20] sm:$0xff]  ;;  %s1668_s20 = sshll.u32 %s1729_s30, 4  ;;  %s1669_s20 = int_to_ptr.vmem [resolvable:$false] %s1668_s20 }
  0x33   : > { %1568 = vmatprep.subr.msk.mxu1 %vm402_vm0, %v339_v40  ;;  %1116 = vperm.xlu0 %1646, %v1113_v41   ;;  %s1670_s21 = scalar_lea.vmem %s1669_s20, 128  ;;  %p1671_p0 = scmp.lt.s32.totalorder %s1343_s10, %s1669_s20 }
  0x34   : > { %p1672_p1 = scmp.lt.s32.totalorder %s1670_s21, %s1664_s19 }
  0x35   : > { %1521 = vmatpush3.xpose.msk.msra.mxu0 %vm402_vm0, %v291_v42 }
  0x36   : > { %1569 = vmatpush3.xpose.msk.msra.mxu1 %vm402_vm0, %v323_v43  ;;  %1522 = vmatprep.subr.msk.mxu0 %vm402_vm0, %v306_v44  ;;  %p1673_p2 = por %p1672_p1, %p1671_p0 }
  0x37   : > { %1570 = vmatprep.subr.msk.mxu1 %vm402_vm0, %v338_v45 }
  0x38   : > { %p1674_p3 = pnand %p1673_p2, %p1667_p13 }
  0x39   : > { %1523 = vmatpush3.xpose.msk.msra.mxu0 %vm402_vm0, %v290_v46 }
  0x3a   : > { %1571 = vmatpush3.xpose.msk.msra.mxu1 %vm402_vm0, %v322_v47  ;;  %1524 = vmatprep.subr.msk.mxu0 %vm402_vm0, %v305_v48 }
  0x3b   : > { %1572 = vmatprep.subr.msk.mxu1 %vm402_vm0, %v337_v49 }
  0x3d   : > { %1525 = vmatpush3.xpose.msk.msra.mxu0 %vm402_vm0, %v289_v50 }
  0x3e   : > { %1573 = vmatpush3.xpose.msk.msra.mxu1 %vm402_vm0, %v321_v51  ;;  %1526 = vmatprep.subr.msk.mxu0 %vm402_vm0, %v304_v52 }
  0x3f   : > { %1574 = vmatprep.subr.msk.mxu1 %vm402_vm0, %v336_v53 }
  0x41   : > { %1527 = vmatpush3.xpose.msk.msra.mxu0 %vm402_vm0, %v288_v54 }
  0x42   : > { %1575 = vmatpush3.xpose.msk.msra.mxu1 %vm402_vm0, %v320_v55  ;;  %1528 = vmatprep.subr.msk.mxu0 %vm402_vm0, %v303_v56 }
  0x43   : > { %1576 = vmatprep.subr.msk.mxu1 %vm402_vm0, %v335_v57 }
  0x45   : > { %1529 = vmatpush3.xpose.msk.msra.mxu0 %vm402_vm0, %v287_v58 }
  0x46   : > { %1577 = vmatpush3.xpose.msk.msra.mxu1 %vm402_vm0, %v319_v59  ;;  %1530 = vmatprep.subr.msk.mxu0 %vm402_vm0, %v302_v60 }
  0x47   : > { %1578 = vmatprep.subr.msk.mxu1 %vm402_vm0, %v334_v61 }
  0x49   : > { %1531 = vmatpush3.xpose.msk.msra.mxu0 %vm402_vm0, %v286_v62 }
  0x4a   : > { %1579 = vmatpush3.xpose.msk.msra.mxu1 %vm402_vm0, %v318_v63  ;;  %1532 = vmatprep.subr.msk.mxu0 %vm402_vm0, %v301_v0 }
  0x4b   : > { %1580 = vmatprep.subr.msk.mxu1 %vm402_vm0, %v333_v2 }
  0x4d   : > { %1533 = vmatpush3.xpose.msk.msra.mxu0 %vm402_vm0, %v285_v3 }
  0x4e   : > { %1581 = vmatpush3.xpose.msk.msra.mxu1 %vm402_vm0, %v317_v4  ;;  %1534 = vmatprep.subr.msk.mxu0 %vm402_vm0, %v300_v5 }
  0x4f   : > { %1582 = vmatprep.subr.msk.mxu1 %vm402_vm0, %v332_v6 }
  0x51   : > { %1535 = vmatpush3.xpose.msk.msra.mxu0 %vm402_vm0, %v284_v7 }
  0x52   : > { %1583 = vmatpush3.xpose.msk.msra.mxu1 %vm402_vm0, %v316_v8  ;;  %1536 = vmatprep.subr.msk.mxu0 %vm402_vm0, %v299_v9 }
  0x53   : > { %1584 = vmatprep.subr.msk.mxu1 %vm402_vm0, %v331_v10 }
  0x55   : > { %1537 = vmatpush3.xpose.msk.msra.mxu0 %vm402_vm0, %v283_v11 }
  0x56   : > { %1585 = vmatpush3.xpose.msk.msra.mxu1 %vm402_vm0, %v315_v12  ;;  %1538 = vmatprep.subr.msk.mxu0 %vm402_vm0, %v298_v13 }
  0x57   : > { %1586 = vmatprep.subr.msk.mxu1 %vm402_vm0, %v330_v14 }
  0x59   : > { %1539 = vmatpush3.xpose.msk.msra.mxu0 %vm402_vm0, %v282_v15 }
  0x5a   : > { %1587 = vmatpush3.xpose.msk.msra.mxu1 %vm402_vm0, %v314_v16 }
  0x5c   : > { %1541 = vmatmul.mubr.msk.f32.vlgmr.msra.gmra.mxu0 %vm402_vm0, %v1823_v1 }
  0x5d   : > { %1589 = vmatmul.mubr.msk.f32.vlgmr.msra.gmra.mxu1 %vm402_vm0, %v1823_v1  ;;  %1542 = vmatprep.mubr.msk.f32.mxu0 %vm402_vm0, %v347_v17  ;;  %v349_v1 = vld [vmem:[%s2157_s1 + $0x18] sm:$0xff] }
  0x5e   : > { %1590 = vmatprep.mubr.msk.f32.mxu1 %vm402_vm0, %v347_v17 }
  0x60   : > { %1543 = vmatmul.mubr.msk.f32.gmra.mxu0 %vm402_vm0, %v347_v17 }
  0x61   : > { %1591 = vmatmul.mubr.msk.f32.gmra.mxu1 %vm402_vm0, %v347_v17  ;;  %1544 = vmatprep.mubr.msk.f32.mxu0 %vm402_vm0, %v348_v18 }
  0x62   : > { %1592 = vmatprep.mubr.msk.f32.mxu1 %vm402_vm0, %v348_v18 }
  0x64   : > { %1545 = vmatmul.mubr.msk.f32.gmra.mxu0 %vm402_vm0, %v348_v18 }
  0x65   : > { %1593 = vmatmul.mubr.msk.f32.gmra.mxu1 %vm402_vm0, %v348_v18  ;;  %1546 = vmatprep.mubr.msk.f32.mxu0 %vm402_vm0, %v349_v1 }
  0x66   : > { %1594 = vmatprep.mubr.msk.f32.mxu1 %vm402_vm0, %v349_v1 }
  0x68   : > { %1547 = vmatmul.mubr.msk.f32.gmra.mxu0 %vm402_vm0, %v349_v1 }
  0x69   : > { %1595 = vmatmul.mubr.msk.f32.gmra.mxu1 %vm402_vm0, %v349_v1  ;;  %1548 = vmatprep.mubr.msk.f32.mxu0 %vm402_vm0, %v350_v19 }
  0x6a   : > { %1596 = vmatprep.mubr.msk.f32.mxu1 %vm402_vm0, %v350_v19 }
  0x6c   : > { %1549 = vmatmul.mubr.msk.f32.gmra.mxu0 %vm402_vm0, %v350_v19 }
  0x6d   : > { %1597 = vmatmul.mubr.msk.f32.gmra.mxu1 %vm402_vm0, %v350_v19  ;;  %1550 = vmatprep.mubr.msk.f32.mxu0 %vm402_vm0, %v351_v20 }
  0x6e   : > { %1598 = vmatprep.mubr.msk.f32.mxu1 %vm402_vm0, %v351_v20 }
  0x70   : > { %1551 = vmatmul.mubr.msk.f32.gmra.mxu0 %vm402_vm0, %v351_v20 }
  0x71   : > { %1599 = vmatmul.mubr.msk.f32.gmra.mxu1 %vm402_vm0, %v351_v20  ;;  %1552 = vmatprep.mubr.msk.f32.mxu0 %vm402_vm0, %v352_v21 }
  0x72   : > { %1600 = vmatprep.mubr.msk.f32.mxu1 %vm402_vm0, %v352_v21 }
  0x74   : > { %1553 = vmatmul.mubr.msk.f32.gmra.mxu0 %vm402_vm0, %v352_v21 }
  0x75   : > { %1601 = vmatmul.mubr.msk.f32.gmra.mxu1 %vm402_vm0, %v352_v21  ;;  %1554 = vmatprep.mubr.msk.f32.mxu0 %vm402_vm0, %v353_v22 }
  0x76   : > { %1602 = vmatprep.mubr.msk.f32.mxu1 %vm402_vm0, %v353_v22 }
  0x78   : > { %1555 = vmatmul.mubr.msk.f32.gmra.mxu0 %vm402_vm0, %v353_v22 }
  0x79   : > { %1603 = vmatmul.mubr.msk.f32.gmra.mxu1 %vm402_vm0, %v353_v22  ;;  %982 = vmatprep.mubr.f32.mxu0 %v1727_v23 }
  0x7a   : > { %1071 = vmatprep.mubr.f32.mxu1 %v1727_v23 }
  0x94   : > { %v400_v46 = vpop.permute.xlu0 %399  ;;  %v390_v49 = vpop.permute.xlu1 %389 }
  0x98   : > { %v385_v57 = vpop.permute.xlu1 %384 }
  0x9a   : > { %v395_v54 = vpop.permute.xlu0 %394 }
  0x9c   : > { %v375_v14 = vpop.permute.xlu1 %374 }
  0x9e   : > { %v380_v5 = vpop.permute.xlu0 %379 }
 0x11c   : > { %v2055_v24 = vpop.f32.mrf.mxu0 }
 0x11d   : > { %v2057_v25 = vpop.f32.mrf.mxu1 }
 0x11e   : > { %v2059_v26 = vpop.f32.mrf.mxu0 }
 0x11f   : > { %v2061_v27 = vpop.f32.mrf.mxu1 }
 0x120   : > { %v2063_v28 = vpop.f32.mrf.mxu0 }
 0x121   : > { %v2065_v29 = vpop.f32.mrf.mxu1 }
 0x122   : > { %v2067_v30 = vpop.f32.mrf.mxu0 }
 0x123   : > { %v2069_v31 = vpop.f32.mrf.mxu1 }
 0x124   : > { %v2071_v32 = vpop.f32.mrf.mxu0 }
 0x125   : > { %v2073_v33 = vpop.f32.mrf.mxu1 }
 0x126   : > { %v2075_v34 = vpop.f32.mrf.mxu0 }
 0x127   : > { %v2077_v35 = vpop.f32.mrf.mxu1 }
 0x128   : > { %v703_v36 = vpop.f32.mrf.mxu0 }
 0x129   : > { %v816_v37 = vpop.f32.mrf.mxu1 }
 0x12a   : > { %v705_v38 = vpop.f32.mrf.mxu0 }
 0x12b   : > { %v818_v39 = vpop.f32.mrf.mxu1  ;;  %v706_v22 = vadd.f32 %v705_v38, %v380_v5  ;;  %v698_v38 = vadd.f32 %v2071_v32, %v375_v14 }
 0x12c   : > { %v709_v40 = vpop.f32.mrf.mxu0 }
 0x12d   : > { %v822_v41 = vpop.f32.mrf.mxu1  ;;  %v710_v1 = vadd.f32 %v709_v40, %v385_v57  ;;  %v700_v40 = vadd.f32 %v2075_v34, %v375_v14  ;;  %v858_v34 = vmax.f32 %v706_v22, 0.0 }
 0x12e   : > { %v711_v42 = vpop.f32.mrf.mxu0  ;;  %v823_v19 = vadd.f32 %v822_v41, %v385_v57  ;;  %v813_v41 = vadd.f32 %v2077_v35, %v375_v14 }
 0x12f   : > { %v824_v43 = vpop.f32.mrf.mxu1  ;;  %v712_v15 = vadd.f32 %v711_v42, %v385_v57 }
 0x130   : > { %v715_v44 = vpop.f32.mrf.mxu0  ;;  %v825_v16 = vadd.f32 %v824_v43, %v385_v57 }
 0x131   : > { %v828_v45 = vpop.f32.mrf.mxu1  ;;  %v716_v10 = vadd.f32 %v715_v44, %v390_v49 }
 0x132   : > { %v717_v47 = vpop.f32.mrf.mxu0  ;;  %v829_v11 = vadd.f32 %v828_v45, %v390_v49  ;;  %v704_v45 = vadd.f32 %v703_v36, %v380_v5  ;;  %v863_v36 = vmax.f32 %v823_v19, 0.0 }
 0x133   : > { %v830_v48 = vpop.f32.mrf.mxu1  ;;  %v718_v6 = vadd.f32 %v717_v47, %v390_v49  ;;  %v865_v42 = vmax.f32 %v716_v10, 0.0 }
 0x134   : > { %v721_v50 = vpop.f32.mrf.mxu0  ;;  %v831_v7 = vadd.f32 %v830_v48, %v390_v49  ;;  %v817_v48 = vadd.f32 %v816_v37, %v380_v5  ;;  %v867_v43 = vmax.f32 %v829_v11, 0.0  ;;  %v370_v49 = vpop.permute.xlu0 %369  ;;  %v857_v32 = vmax.f32 %v704_v45, 0.0 }
 0x135   : > { %v834_v51 = vpop.f32.mrf.mxu1  ;;  %v722_v3 = vadd.f32 %v721_v50, %v395_v54  ;;  %v866_v47 = vmax.f32 %v718_v6, 0.0  ;;  %v862_v50 = vmax.f32 %v712_v15, 0.0  ;;  %v365_v37 = vpop.permute.xlu1 %364  ;;  %v692_v35 = vadd.f32 %v2063_v28, %v370_v49 }
 0x136   : > { %v723_v52 = vpop.f32.mrf.mxu0  ;;  %v835_v4 = vadd.f32 %v834_v51, %v395_v54  ;;  %v868_v44 = vmax.f32 %v831_v7, 0.0  ;;  %v864_v51 = vmax.f32 %v825_v16, 0.0  ;;  %v859_v57 = vmax.f32 %v817_v48, 0.0 }
 0x137   : > { %v836_v53 = vpop.f32.mrf.mxu1  ;;  %v724_v62 = vadd.f32 %v723_v52, %v395_v54  ;;  %v869_v20 = vmax.f32 %v722_v3, 0.0  ;;  %v861_v52 = vmax.f32 %v710_v1, 0.0  ;;  %v878_v3 = vld [vmem:[%s2159_s3 + $0x8] sm:$0xff] }
 0x138   : > { %v727_v55 = vpop.f32.mrf.mxu0  ;;  %v837_v63 = vadd.f32 %v836_v53, %v395_v54  ;;  %v871_v21 = vmax.f32 %v835_v4, 0.0  ;;  %v694_v53 = vadd.f32 %v2067_v30, %v370_v49  ;;  %v807_v54 = vadd.f32 %v2069_v31, %v370_v49  ;;  %v879_v4 = vld [vmem:[%s2159_s3 + $0x10] sm:$0xff]  ;;  %v903_v16 = vpop.permute.xlu0 %902 }
 0x139   : > { %v840_v56 = vpop.f32.mrf.mxu1  ;;  %v728_v58 = vadd.f32 %v727_v55, %v400_v46  ;;  %v870_v17 = vmax.f32 %v724_v62, 0.0  ;;  %v856_v30 = vmax.f32 %v813_v41, 0.0  ;;  %v686_v31 = vadd.f32 %v2055_v24, %v365_v37  ;;  %v898_v1 = vpop.permute.xlu1 %897 }
 0x13a   : > { %v841_v59 = vadd.f32 %v840_v56, %v400_v46  ;;  %v729_v60 = vpop.f32.mrf.mxu0  ;;  %v872_v18 = vmax.f32 %v837_v63, 0.0  ;;  %v805_v56 = vadd.f32 %v2065_v29, %v370_v49  ;;  %v850_v29 = vmax.f32 %v694_v53, 0.0 }
 0x13b   : > { %v842_v61 = vpop.f32.mrf.mxu1  ;;  %v730_v0 = vadd.f32 %v729_v60, %v400_v46  ;;  %v873_v12 = vmax.f32 %v728_v58, 0.0  ;;  %v801_v58 = vadd.f32 %v2061_v27, %v365_v37  ;;  %v799_v60 = vadd.f32 %v2057_v25, %v365_v37  ;;  %v877_v25 = vld [vmem:[%s2159_s3] sm:$0xff] }
 0x13c   : > { %v843_v2 = vadd.f32 %v842_v61, %v400_v46  ;;  %v875_v13 = vmax.f32 %v841_v59, 0.0  ;;  %v819_v46 = vadd.f32 %v818_v39, %v380_v5  ;;  %v811_v39 = vadd.f32 %v2073_v33, %v375_v14  ;;  %v880_v5 = vld [vmem:[%s2159_s3 + $0x18] sm:$0xff] }
 0x13d   : > { %v874_v8 = vmax.f32 %v730_v0, 0.0  ;;  %v688_v33 = vadd.f32 %v2059_v26, %v365_v37  ;;  %v854_v59 = vmax.f32 %v700_v40, 0.0  ;;  %v853_v61 = vmax.f32 %v698_v38, 0.0  ;;  %v888_v38 = vpop.permute.xlu1 %887 }
 0x13e   : > { %v876_v9 = vmax.f32 %v843_v2, 0.0  ;;  %v860_v55 = vmax.f32 %v819_v46, 0.0  ;;  %v855_v28 = vmax.f32 %v811_v39, 0.0  ;;  %v852_v62 = vmax.f32 %v807_v54, 0.0 }
 0x13f   : > { %934 = vmatprep.subr.mxu0 %v874_v8  ;;  %v849_v63 = vmax.f32 %v692_v35, 0.0  ;;  %v851_v26 = vmax.f32 %v805_v56, 0.0  ;;  %v846_v27 = vmax.f32 %v688_v33, 0.0  ;;  %v848_v0 = vmax.f32 %v801_v58, 0.0 }
 0x140   : > { %1023 = vmatprep.subr.mxu1 %v876_v9  ;;  %935 = vmatpush1.msra.mxu0 %v873_v12  ;;  %v845_v2 = vmax.f32 %v686_v31, 0.0  ;;  %v847_v24 = vmax.f32 %v799_v60, 0.0 }
 0x141   : > { %1024 = vmatpush1.msra.mxu1 %v875_v13  ;;  %936 = vmatprep.subr.mxu0 %v870_v17 }
 0x142   : > { %1025 = vmatprep.subr.mxu1 %v872_v18  ;;  %937 = vmatpush1.msra.mxu0 %v869_v20 }
 0x143   : > { %1026 = vmatpush1.msra.mxu1 %v871_v21  ;;  %938 = vmatprep.subr.mxu0 %v866_v47 }
 0x144   : > { %1027 = vmatprep.subr.mxu1 %v868_v44  ;;  %939 = vmatpush1.msra.mxu0 %v865_v42  ;;  %v893_v42 = vpop.permute.xlu0 %892 }
 0x145   : > { %1028 = vmatpush1.msra.mxu1 %v867_v43  ;;  %940 = vmatprep.subr.mxu0 %v862_v50 }
 0x146   : > { %1029 = vmatprep.subr.mxu1 %v864_v51  ;;  %941 = vmatpush1.msra.mxu0 %v861_v52 }
 0x147   : > { %1030 = vmatpush1.msra.mxu1 %v863_v36  ;;  %942 = vmatprep.subr.mxu0 %v858_v34 }
 0x148   : > { %1031 = vmatprep.subr.mxu1 %v860_v55  ;;  %943 = vmatpush1.msra.mxu0 %v857_v32 }
 0x149   : > { %1032 = vmatpush1.msra.mxu1 %v859_v57  ;;  %944 = vmatprep.subr.mxu0 %v854_v59 }
 0x14a   : > { %1033 = vmatprep.subr.mxu1 %v856_v30  ;;  %945 = vmatpush1.msra.mxu0 %v853_v61 }
 0x14b   : > { %1034 = vmatpush1.msra.mxu1 %v855_v28  ;;  %946 = vmatprep.subr.mxu0 %v850_v29  ;;  %v1112_v29 = vld [vmem:[%s2161_s5] sm:$0x1] }
 0x14c   : > { %1035 = vmatprep.subr.mxu1 %v852_v62  ;;  %947 = vmatpush1.msra.mxu0 %v849_v63  ;;  %v1119_v62 = vlaneseq }
 0x14d   : > { %1036 = vmatpush1.msra.mxu1 %v851_v26  ;;  %948 = vmatprep.subr.mxu0 %v846_v27  ;;  %v1117_v27 = vpop.permute.xlu0 %1116 }
 0x14e   : > { %1037 = vmatprep.subr.mxu1 %v848_v0  ;;  %949 = vmatpush1.msra.mxu0 %v845_v2  ;;  %v1120_v63 = vshrl.u32 %v1119_v62, 7  ;;  %vm1324_vm3 = vcmp.lt.s32.totalorder %v1119_v62, 512 }
 0x14f   : > { %1038 = vmatpush1.msra.mxu1 %v847_v24  ;;  %1488 = vmatmul.mubr.msk.f32.vlgmr.msra.gmra.mxu0 %vm905_vm1, %v877_v25 }
 0x150   : > { %1492 = vmatmul.mubr.msk.f32.vlgmr.msra.gmra.mxu1 %vm905_vm1, %v877_v25  ;;  %988 = vmatprep.mubr.f32.mxu0 %v1727_v23  ;;  %v1121_v26 = vsub.s32 0, %v1120_v63 }
 0x151   : > { %1077 = vmatprep.mubr.f32.mxu1 %v1727_v23 }
 0x152   : > { %v1122_v0 = vrot.slane %v1117_v27, %v1121_v26 }
 0x153   : > { %1489 = vmatmul.mubr.msk.f32.gmra.mxu0 %vm905_vm1, %v878_v3 }
 0x154   : > { %1493 = vmatmul.mubr.msk.f32.gmra.mxu1 %vm905_vm1, %v878_v3  ;;  %994 = vmatprep.mubr.f32.mxu0 %v1727_v23 }
 0x155   : > { %1083 = vmatprep.mubr.f32.mxu1 %v1727_v23 }
 0x157   : > { %1490 = vmatmul.mubr.msk.f32.gmra.mxu0 %vm905_vm1, %v879_v4 }
 0x158   : > { %1494 = vmatmul.mubr.msk.f32.gmra.mxu1 %vm905_vm1, %v879_v4  ;;  %1000 = vmatprep.mubr.f32.mxu0 %v1727_v23 }
 0x159   : > { %1089 = vmatprep.mubr.f32.mxu1 %v1727_v23 }
 0x15b   : > { %1491 = vmatmul.mubr.msk.f32.gmra.mxu0 %vm905_vm1, %v880_v5 }
 0x15c   : > { %1495 = vmatmul.mubr.msk.f32.gmra.mxu1 %vm905_vm1, %v880_v5  ;;  %1191 = vmatprep.mubr.f32.mxu0 %v1727_v23 }
 0x15d   : > { %1262 = vmatprep.mubr.f32.mxu1 %v1727_v23 }
 0x20f   : > { %v984_v6 = vpop.f32.mrf.mxu0 }
 0x210   : > { %v1073_v7 = vpop.f32.mrf.mxu1  ;;  %v985_v35 = vadd.f32 %v984_v6, %v888_v38 }
 0x211   : > { %v986_v8 = vpop.f32.mrf.mxu0  ;;  %v1074_v56 = vadd.f32 %v1073_v7, %v888_v38 }
 0x212   : > { %v1075_v9 = vpop.f32.mrf.mxu1  ;;  %v987_v53 = vadd.f32 %v986_v8, %v888_v38  ;;  %v1096_v61 = vmax.f32 %v985_v35, 0.0 }
 0x213   : > { %v990_v10 = vpop.f32.mrf.mxu0  ;;  %v1076_v54 = vadd.f32 %v1075_v9, %v888_v38  ;;  %v1098_v28 = vmax.f32 %v1074_v56, 0.0 }
 0x214   : > { %v1079_v11 = vpop.f32.mrf.mxu1  ;;  %v991_v39 = vadd.f32 %v990_v10, %v893_v42  ;;  %v1097_v31 = vmax.f32 %v987_v53, 0.0 }
 0x215   : > { %v992_v12 = vpop.f32.mrf.mxu0  ;;  %v1080_v52 = vadd.f32 %v1079_v11, %v893_v42  ;;  %v1099_v60 = vmax.f32 %v1076_v54, 0.0 }
 0x216   : > { %v1081_v13 = vpop.f32.mrf.mxu1  ;;  %v993_v40 = vadd.f32 %v992_v12, %v893_v42  ;;  %v1100_v59 = vmax.f32 %v991_v39, 0.0 }
 0x217   : > { %v996_v14 = vpop.f32.mrf.mxu0  ;;  %v1082_v41 = vadd.f32 %v1081_v13, %v893_v42  ;;  %v1102_v30 = vmax.f32 %v1080_v52, 0.0 }
 0x218   : > { %v1085_v15 = vpop.f32.mrf.mxu1  ;;  %v997_v43 = vadd.f32 %v996_v14, %v898_v1  ;;  %v1101_v33 = vmax.f32 %v993_v40, 0.0 }
 0x219   : > { %v998_v17 = vpop.f32.mrf.mxu0  ;;  %v1086_v49 = vadd.f32 %v1085_v15, %v898_v1  ;;  %v1103_v58 = vmax.f32 %v1082_v41, 0.0 }
 0x21a   : > { %v1087_v18 = vpop.f32.mrf.mxu1  ;;  %v999_v47 = vadd.f32 %v998_v17, %v898_v1  ;;  %v1104_v32 = vmax.f32 %v997_v43, 0.0 }
 0x21b   : > { %v1002_v19 = vpop.f32.mrf.mxu0  ;;  %v1088_v44 = vadd.f32 %v1087_v18, %v898_v1  ;;  %v1106_v57 = vmax.f32 %v1086_v49, 0.0 }
 0x21c   : > { %v1091_v20 = vpop.f32.mrf.mxu1  ;;  %v1003_v21 = vadd.f32 %v1002_v19, %v903_v16  ;;  %v1105_v34 = vmax.f32 %v999_v47, 0.0  ;;  %v1728_v19 = vmov 1966171168  }
 0x21d   : > { %v1092_v22 = vadd.f32 %v1091_v20, %v903_v16  ;;  %v1004_v46 = vpop.f32.mrf.mxu0  ;;  %v1107_v55 = vmax.f32 %v1088_v44, 0.0  ;;  %v1300_v20 = vunpack.c.l.s4 %v1728_v19 }
 0x21e   : > { %v1093_v23 = vpop.f32.mrf.mxu1  ;;  %v1005_v45 = vadd.f32 %v1004_v46, %v903_v16  ;;  %v1108_v36 = vmax.f32 %v1003_v21, 0.0 }
 0x21f   : > { %v1094_v48 = vadd.f32 %v1093_v23, %v903_v16  ;;  %v1110_v37 = vmax.f32 %v1092_v22, 0.0  ;;  %v1301_v21 = vunpack.c.0.s8 %v1300_v20 }
 0x220   : > { %v1109_v50 = vmax.f32 %v1005_v45, 0.0 }
 0x221   : > { %v1111_v51 = vmax.f32 %v1094_v48, 0.0  ;;  %v1304_v23 = vsub.s32 %v1301_v21, %v1120_v63 }
 0x222   : > { %1151 = vmatprep.subr.mxu0 %v1109_v50 }
 0x223   : > { %1222 = vmatprep.subr.mxu1 %v1111_v51  ;;  %1152 = vmatpush1.msra.mxu0 %v1108_v36 }
 0x224   : > { %1223 = vmatpush1.msra.mxu1 %v1110_v37  ;;  %1153 = vmatprep.subr.mxu0 %v1105_v34 }
 0x225   : > { %1224 = vmatprep.subr.mxu1 %v1107_v55  ;;  %1154 = vmatpush1.msra.mxu0 %v1104_v32 }
 0x226   : > { %1225 = vmatpush1.msra.mxu1 %v1106_v57  ;;  %1155 = vmatprep.subr.mxu0 %v1101_v33 }
 0x227   : > { %1226 = vmatprep.subr.mxu1 %v1103_v58  ;;  %1156 = vmatpush1.msra.mxu0 %v1100_v59 }
 0x228   : > { %1227 = vmatpush1.msra.mxu1 %v1102_v30  ;;  %1157 = vmatprep.subr.mxu0 %v1097_v31 }
 0x229   : > { %1228 = vmatprep.subr.mxu1 %v1099_v60  ;;  %1158 = vmatpush1.msra.mxu0 %v1096_v61 }
 0x22a   : > { %1229 = vmatpush1.msra.mxu1 %v1098_v28  ;;  %1496 = vmatmul.mubr.msk.f32.vlgmr.msra.gmra.mxu0 %vm1123_vm2, %v1112_v29 }
 0x22b   : > { %1497 = vmatmul.mubr.msk.f32.vlgmr.msra.gmra.mxu1 %vm1123_vm2, %v1112_v29 }
 0x2ea   : > { %v1193_v2 = vpop.f32.mrf.mxu0 }
 0x2eb   : > { %v1264_v24 = vpop.f32.mrf.mxu1  ;;  %v1194_v25 = vadd.f32 %v1193_v2, %v1122_v0 }
 0x2ec   : > { %v1265_v3 = vadd.f32 %v1264_v24, %v1122_v0  ;;  %v1195_v4 = vpop.f32.mrf.mxu0 }
 0x2ed   : > { %v1266_v5 = vpop.f32.mrf.mxu1  ;;  %v1498_v6 = vmul.f32 -1.442695, %v1194_v25  ;;  %v1196_v8 = vadd.f32 %v1195_v4, %v1122_v0 }
 0x2ee   : > { %v1500_v7 = vmul.f32 -1.442695, %v1265_v3  ;;  %v1267_v9 = vadd.f32 %v1266_v5, %v1122_v0 }
 0x2ef   : > { %1648 = vpow2.f32 %v1498_v6  ;;  %v1499_v10 = vmul.f32 -1.442695, %v1196_v8 }
 0x2f0   : > { %v1501_v11 = vmul.f32 -1.442695, %v1267_v9  ;;  %1650 = vpow2.f32 %v1500_v7 }
 0x2f1   : > { %1652 = vpow2.f32 %v1499_v10 }
 0x2f2   : > { %1654 = vpow2.f32 %v1501_v11 }
 0x2fc   : > { %v1649_v12 = vpop.eup %1648 }
 0x2fd   : > { %v1651_v13 = vpop.eup %1650  ;;  %v1281_v14 = vadd.f32 1.0, %v1649_v12 }
 0x2fe   : > { %v1653_v15 = vpop.eup %1652  ;;  %v1283_v16 = vadd.f32 1.0, %v1651_v13 }
 0x2ff   : > { %v1655_v17 = vpop.eup %1654  ;;  %1656 = vrcp.f32 %v1281_v14  ;;  %v1282_v18 = vadd.f32 1.0, %v1653_v15 }
 0x300   : > { %1658 = vrcp.f32 %v1283_v16  ;;  %v1284_v1 = vadd.f32 1.0, %v1655_v17 }
 0x301   : > { %1660 = vrcp.f32 %v1282_v18 }
 0x302   : > { %1662 = vrcp.f32 %v1284_v1 }
 0x30c   : > { %v1657_v22 = vpop.eup %1656 }
 0x30d   : > { %v1659_v46 = vpop.eup %1658 }
 0x30e   : > { %v1661_v47 = vpop.eup %1660 }
 0x30f   : > { %v1663_v44 = vpop.eup %1662  ;;  %v1297_v45 = vcombine.low %v1657_v22, %v1661_v47 }
 0x310   : > { %v1298_v48 = vcombine.low %v1659_v46, %v1663_v44 }
 0x311   : > { %v1305_v42 = vrot.slane %v1297_v45, %v1304_v23 }
 0x312   : > { %v1312_v43 = vrot.slane %v1298_v48, %v1304_v23 }
 0x314   : > { %v1313_v49 = vcombine.low %v1305_v42, %v1312_v43 }
 0x316   : > { %v1320_v40 = vrot.slane %v1313_v49, %v1304_v23 }
 0x318   : > { %1326 = vst.msk [vmem:[%s274_s9] sm:$0xf] %vm1324_vm3, %v1320_v40 }
 0x319   : > { %1677 = shalt.err (!%p1674_p3)
}
 0x31a   : > { %s1678_s22 = scalar_lea.hbm %s1340_s17, 64  ;;  %s1682_s24 = scalar_lea.hbm %s2163_s7, 128 }
 0x31b   : > { %p1679_p4 = scmp.ne.s32.totalorder %s1340_s17, %s1678_s22  ;;  %p1683_p9 = scmp.lt.s32.totalorder %s1340_s17, %s2163_s7 }
 0x31c   : > { %p1684_p10 = scmp.lt.s32.totalorder %s1682_s24, %s1678_s22 }
 0x31d   : > { %p1680_p7 = pnand %p1679_p4, %p1808_p5 }
 0x31e   : > { %p1685_p11 = por %p1684_p10, %p1683_p9 }
 0x31f   : > { %p1681_p8 = pneg %p1680_p7 }
 0x321   : > { %p1686_p12 = pnand %p1685_p11, %p1681_p8 }
 0x323   : > { %1689 = shalt.err (!%p1686_p12)
}
 0x324   : > { %1604 = dma.vmem_to_hbm [thread:$0]  (%p1808_p5), %s1343_s10, 64, %s1340_s17, %s1328_s18  }
 0x325 PF: > { %p1610_p13 = scmp.ge.s32.totalorder %s1724_s29, 2  ;;  %s1354_s9 = sand.u32 1, %s1712_s26  }
 0x326   : > { %s1355_s15 = scalar_lea.sflag [#allocation4], %s1354_s9 }
 0x327   : > { %p1607_p0 = pnand %p1610_p13, %p1812_p6 }
 0x329   : > { %p1608_p1 = pneg %p1607_p0 }
 0x32b   : > { %1707 = dma.done.wait (%p1608_p1), %s1355_s15, 64  }
 0x32c   : > { %1709 = vsyncadd (%p1608_p1), %s1355_s15, 4294967232  ;;  %p19_p2 = scmp.ge.s32.totalorder %s1796_s8, 4   ;;  %s2166_s26 = smov %s1716_s27 }
 0x32d   : > { %s2167_s27 = smov %s1720_s28  ;;  %s2168_s28 = smov %s1806_s11 }
 0x32e   : > { %s2169_s29 = smov %s1796_s8  ;;  %21 = sbr.rel (!%p19_p2) target bundleno = 6 (0x6), region = 83 }
 0x333   :  { %1360 = vsyncpa [#allocation4], 1 }
 0x334   :  { %1362 = vsyncpa [#allocation4 + $0x1], 1 }

</bundles_post_ra>
